<compile_context>
chip_gen: v7x
topology: tpu7x:2x2x1
jax: 0.10.0
libtpu: 0.0.40
codegen_flags: <defaults>
</compile_context>

<pallas_src>
import jax
import jax.numpy as jnp
from jax import lax
from jax.experimental import pallas as pl
from jax.experimental.pallas import tpu as pltpu


# ----------------------------------------------------------------------------
# Kernel bodies
# ----------------------------------------------------------------------------
def _batched_kernel(z_ref, o_ref):
    """Small-N path: z_ref is (BB, N, F); o_ref is (BB, N, N)."""
    z = z_ref[...]
    # Batched z @ z^T: contract feature axis of both operands (no explicit
    # transpose / relayout), accumulate in f32 on the MXU.
    logits = lax.dot_general(
        z, z,
        dimension_numbers=(((2,), (2,)), ((0,), (0,))),
        preferred_element_type=jnp.float32,
    )
    o_ref[...] = jax.nn.sigmoid(logits).astype(o_ref.dtype)


def _tiled_kernel(zr_ref, zc_ref, o_ref):
    """Large-N path: zr_ref (1, TM, F), zc_ref (1, TN, F), o_ref (1, TM, TN)."""
    zr = zr_ref[0]
    zc = zc_ref[0]
    logits = lax.dot_general(
        zr, zc,
        dimension_numbers=(((1,), (1,)), ((), ())),   # zr @ zc^T, no transpose op
        preferred_element_type=jnp.float32,
    )
    o_ref[0] = jax.nn.sigmoid(logits).astype(o_ref.dtype)


# ----------------------------------------------------------------------------
# Wrappers
# ----------------------------------------------------------------------------
def _stru_decoder_small(z, out_dtype):
    B, N, F = z.shape
    in_itemsize = z.dtype.itemsize
    out_itemsize = jnp.dtype(out_dtype).itemsize

    # Fold several batch elements per grid step (~4 MiB per-step budget),
    # capped at 32 as suggested; this amortizes fixed per-step overhead.
    per_batch_bytes = N * F * in_itemsize + N * N * out_itemsize
    bb = max(1, (4 << 20) // max(1, per_batch_bytes))
    bb = max(1, min(bb, 32, B))
    b_pad = pl.cdiv(B, bb) * bb
    if b_pad != B:
        z = jnp.pad(z, ((0, b_pad - B), (0, 0), (0, 0)))

    grid = (b_pad // bb,)
    z_spec = pl.BlockSpec((bb, N, F), lambda b: (b, 0, 0))
    o_spec = pl.BlockSpec((bb, N, N), lambda b: (b, 0, 0))

    cost = pl.CostEstimate(
        flops=2 * B * N * N * F,
        transcendentals=B * N * N,
        bytes_accessed=B * N * F * in_itemsize + B * N * N * out_itemsize,
    )

    out = pl.pallas_call(
        _batched_kernel,
        out_shape=jax.ShapeDtypeStruct((b_pad, N, N), out_dtype),
        grid_spec=pltpu.PrefetchScalarGridSpec(
            num_scalar_prefetch=0,
            grid=grid,
            in_specs=[z_spec],          # z passed exactly once
            out_specs=o_spec,
        ),
        compiler_params=pltpu.CompilerParams(
            dimension_semantics=("parallel",),
        ),
        cost_estimate=cost,
    )(z)
    return out[:B] if b_pad != B else out


def _tile_sizes(n, f, in_itemsize):
    # 256/512-class output tiles: multiples of 256 fill the v6e/v7x 2x256^2
    # MXU and are 128-aligned for v5e's 4x128^2.  Sized for v7x's 32 MiB
    # scoped / 64 MiB physical VMEM (do not assume v6e's 128 MiB).
    tm = 512 if n >= 512 else 256
    # Shrink if a large feature dim would blow the double-buffered VMEM budget.
    while tm > 128 and 2 * in_itemsize * (2 * tm * f + tm * tm) > (24 << 20):
        tm //= 2
    return tm, tm


def _stru_decoder_tiled(z, out_dtype):
    B, N, F = z.shape
    in_itemsize = z.dtype.itemsize
    out_itemsize = jnp.dtype(out_dtype).itemsize

    tm, tn = _tile_sizes(N, F, in_itemsize)
    n_pad = pl.cdiv(N, tm) * tm          # tm == tn, one padded extent for rows & cols
    if n_pad != N:
        z = jnp.pad(z, ((0, 0), (0, n_pad - N), (0, 0)))
    ni, nj = n_pad // tm, n_pad // tn
    grid = (B, ni, nj)

    # Row tile stays resident across the innermost j axis; column tile changes.
    lhs_spec = pl.BlockSpec((1, tm, F), lambda b, i, j: (b, i, 0))
    rhs_spec = pl.BlockSpec((1, tn, F), lambda b, i, j: (b, j, 0))
    out_spec = pl.BlockSpec((1, tm, tn), lambda b, i, j: (b, i, j))

    cost = pl.CostEstimate(
        flops=2 * B * N * N * F,
        transcendentals=B * N * N,
        bytes_accessed=2 * B * N * F * in_itemsize + B * N * N * out_itemsize,
    )

    # Explicit VMEM budget (with headroom), capped at the v7x scoped default.
    vmem_needed = 2 * in_itemsize * (tm * F + tn * F) + 2 * 4 * tm * tn + (4 << 20)
    vmem_limit = min(max(vmem_needed, 16 << 20), 32 << 20)

    out = pl.pallas_call(
        _tiled_kernel,
        out_shape=jax.ShapeDtypeStruct((B, n_pad, n_pad), out_dtype),
        grid_spec=pltpu.PrefetchScalarGridSpec(
            num_scalar_prefetch=0,
            grid=grid,
            in_specs=[lhs_spec, rhs_spec],
            out_specs=out_spec,
        ),
        compiler_params=pltpu.CompilerParams(
            dimension_semantics=("parallel", "parallel", "parallel"),
            vmem_limit_bytes=vmem_limit,
        ),
        cost_estimate=cost,
    )(z, z)  # same device buffer, two BlockSpecs (different row/col tiles)

    if n_pad != N:
        out = out[:, :N, :N]
    return out


def stru_decoder(z, adj=None, *, out_dtype=jnp.float32):
    """Pallas equivalent of Stru_Decoder.forward(z, adj).

    z:   (B, N, F) float32
    adj: unused (kept for signature parity with the PyTorch module)
    out_dtype: dtype of the returned adjacency (bf16 halves writeback traffic
               for large N; default float32 to match the reference exactly).
    returns: (B, N, N) sigmoid(z @ z^T)
    """
    del adj  # unused by the reference forward pass
    _, N, _ = z.shape
    if N >= 256:
        return _stru_decoder_tiled(z, out_dtype)
    return _stru_decoder_small(z, out_dtype)


# ----------------------------------------------------------------------------
# Self-test
# ----------------------------------------------------------------------------
if __name__ == "__main__":
    key = jax.random.PRNGKey(0)
    k_z, k_adj, k_z2 = jax.random.split(key, 3)

    def _reference(z):
        logits = jnp.einsum("bnf,bmf->bnm", z, z,
                            precision=lax.Precision.HIGHEST)
        return jax.nn.sigmoid(logits)

    # Primary small-shape test (matches the module's implied layout).
    B, N, F = 2, 16, 32
    z = jax.random.normal(k_z, (B, N, F), dtype=jnp.float32)
    adj = jax.random.normal(k_adj, (B, N, N), dtype=jnp.float32)  # unused, parity only

    out = jax.block_until_ready(stru_decoder(z, adj))
    assert out.shape == (B, N, N), out.shape
    assert jnp.allclose(out, _reference(z), atol=1e-4, rtol=1e-4), \
        "small-N path mismatch vs reference"

    # Exercise the tiled path (incl. N padding: 300 -> 512 tile grid).
    B2, N2, F2 = 1, 300, 40
    z2 = jax.random.normal(k_z2, (B2, N2, F2), dtype=jnp.float32)
    out2 = jax.block_until_ready(stru_decoder(z2))
    assert out2.shape == (B2, N2, N2), out2.shape
    assert jnp.allclose(out2, _reference(z2), atol=1e-4, rtol=1e-4), \
        "tiled path mismatch vs reference"

    print("KERNEL_OK")
</pallas_src>

<mosaic_0001>
module attributes {stable_mosaic.version = 11 : i64} {
  func.func @_batched_kernel(%arg0: i32, %arg1: memref<2x16x32xf32, #tpu.memory_space<vmem>>, %arg2: memref<2x16x16xf32, #tpu.memory_space<vmem>>) attributes {dimension_semantics = [#tpu.dimension_semantics<parallel>], iteration_bounds = array<i64: 1>, scalar_prefetch = 0 : i64, scratch_operands = 0 : i64, tpu.core_type = #tpu.core_type<tc>, window_params = [{transform_indices = @transform_0, window_bounds = array<i64: 2, 16, 32>}, {transform_indices = @transform_1, window_bounds = array<i64: 2, 16, 16>}]} {
    %c0 = arith.constant 0 : index
    %c0_0 = arith.constant 0 : index
    %c0_1 = arith.constant 0 : index
    %0 = vector.load %arg1[%c0, %c0_0, %c0_1] : memref<2x16x32xf32, #tpu.memory_space<vmem>>, vector<2x16x32xf32>
    %cst = arith.constant dense<0.000000e+00> : vector<2x16x16xf32>
    %1 = tpu.matmul %0, %0, %cst {dimension_numbers = #tpu.dot_dimension_numbers<[2], [2], [1], [1], [0, 0, 0, 1, 1, 1], [0], [0]>} : vector<2x16x32xf32>, vector<2x16x32xf32>, vector<2x16x16xf32> -> vector<2x16x16xf32>
    %2 = arith.negf %1 : vector<2x16x16xf32>
    %3 = math.exp %2 : vector<2x16x16xf32>
    %cst_2 = arith.constant 1.000000e+00 : f32
    %4 = vector.broadcast %cst_2 : f32 to vector<2x16x16xf32>
    %5 = arith.addf %4, %3 : vector<2x16x16xf32>
    %6 = arith.divf %4, %5 : vector<2x16x16xf32>
    %c0_3 = arith.constant 0 : index
    %c0_4 = arith.constant 0 : index
    %c0_5 = arith.constant 0 : index
    %7 = vector.load %arg2[%c0_3, %c0_4, %c0_5] : memref<2x16x16xf32, #tpu.memory_space<vmem>>, vector<2x16x16xf32>
    tpu.vector_store %arg2[%c0_3, %c0_4, %c0_5], %6 {strides = array<i32>} : memref<2x16x16xf32, #tpu.memory_space<vmem>>, vector<2x16x16xf32>,
    return
  }
  func.func @transform_0(%arg0: i32) -> (i32, i32, i32) {
    %c0_i32 = arith.constant 0 : i32
    %c0_i32_0 = arith.constant 0 : i32
    %c0_i32_1 = arith.constant 0 : i32
    return %arg0, %c0_i32, %c0_i32_0 : i32, i32, i32
  }
  func.func @transform_1(%arg0: i32) -> (i32, i32, i32) {
    %c0_i32 = arith.constant 0 : i32
    %c0_i32_0 = arith.constant 0 : i32
    %c0_i32_1 = arith.constant 0 : i32
    return %arg0, %c0_i32, %c0_i32_0 : i32, i32, i32
  }
}

</mosaic_0001>

<bundles_post_ra>
// kernel: tpu_custom_call.1
= control target key start
LH: loop header
LB: loop body
LE: loop exit
PB: predicated region body
PF: predicated region fallthrough
CT: control target
= control target key end

     0   :  { %6 = vsyncpa [#allocation3], 0  ;;  %s394_s0 = inlined_call_operand.hbm [shape: f32[2,16,32], index: 0, kind: input, shape index: {}]   ;;  %s395_s1 = inlined_call_operand.hbm [shape: f32[2,16,16], index: 1, kind: output, shape index: {}]  }
   0x1   :  { %7 = vsyncpa [#allocation4], 0  ;;  %s350_s6 = smov [#allocation2]   ;;  %s302_s10 = scalar_lea.hbm %s394_s0, 512 }
   0x2   :  { %s13_s7 = sshll.u32 %s350_s6, 4  ;;  %p303_p0 = scmp.ne.s32.totalorder %s394_s0, %s302_s10  ;;  %s14_s7 = int_to_ptr.vmem [resolvable:$true] %s13_s7 }
   0x3   :  { %p306_p1 = scmp.lt.u32.totalorder %s302_s10, %s394_s0 }
   0x5   :  { %p308_p2 = pnand %p306_p1, %p303_p0 }
   0x7   :  { %311 = shalt.err (!%p308_p2)
}
   0x8   :  { %s312_s15 = scalar_lea.vmem %s14_s7, 512  ;;  %p317_p4 = scmp.lt.s32.totalorder %s14_s7, %s14_s7 }
   0x9   :  { %p313_p3 = scmp.ne.s32.totalorder %s14_s7, %s312_s15  ;;  %p318_p5 = scmp.lt.s32.totalorder %s312_s15, %s312_s15 }
   0xb   :  { %p319_p6 = por %p318_p5, %p317_p4 }
   0xd   :  { %p320_p7 = pnand %p319_p6, %p313_p3 }
   0xf   :  { %323 = shalt.err (!%p320_p7)
}
  0x10   :  { %s351_s16 = smov 128   ;;  %s352_s17 = smov 8  }
  0x11   :  { %19 = dma.hbm_to_vmem [thread:$0]  %s394_s0, 512, %s14_s7, [#allocation3], %s351_s16, %s351_s16, %s352_s17  }
  0x12   :  { %346 = dma.done.wait [#allocation3], 512  }
  0x13   :  { %347 = vsyncadd [#allocation3], 4294966784  ;;  %vm27_vm0 = vcmask 261120   ;;  %v23_v0 = vld [vmem:[#allocation2] sm:$0xff]  ;;  %v24_v1 = vld [vmem:[#allocation2 + $0x8] sm:$0xff]  ;;  %vm214_vm2 = vcmask 130048  }
  0x14   :  { %vm271_vm1 = vmpackc.low %vm27_vm0, %vm27_vm0  ;;  %v25_v2 = vld [vmem:[#allocation2 + $0x10] sm:$0xff]  ;;  %v270_v3 = vpack.c.bf16 %v24_v1, %v23_v0  ;;  %v26_v4 = vld [vmem:[#allocation2 + $0x18] sm:$0xff]  ;;  %260 = vmatprep.mubr.msk.f32.mxu0 %vm27_vm0, %v23_v0  ;;  %s353_s0 = smov [#allocation5]  }
  0x15   :  { %267 = vmatprep.mubr.msk.f32.mxu1 %vm27_vm0, %v25_v2  ;;  %v276_v5 = vpack.c.bf16 %v26_v4, %v25_v2  ;;  %s224_s20 = sshll.u32 %s353_s0, 4  ;;  %s225_s20 = int_to_ptr.vmem [resolvable:$true] %s224_s20 }
  0x16   :  { %272 = vmatprep.subr.msk.bf16.mxu0 %vm271_vm1, %v270_v3  ;;  %s324_s21 = scalar_lea.vmem %s225_s20, 512  ;;  %p329_p9 = scmp.lt.s32.totalorder %s225_s20, %s225_s20 }
  0x17   :  { %278 = vmatprep.subr.msk.bf16.mxu1 %vm271_vm1, %v276_v5  ;;  %275 = vmatpush3.bf16.xpose.msk.msra.mxu0 %vm271_vm1, %v270_v3  ;;  %p325_p8 = scmp.ne.s32.totalorder %s225_s20, %s324_s21  ;;  %p330_p10 = scmp.lt.s32.totalorder %s324_s21, %s324_s21 }
  0x18   :  { %281 = vmatpush3.bf16.xpose.msk.msra.mxu1 %vm271_vm1, %v276_v5 }
  0x19   :  { %p331_p11 = por %p330_p10, %p329_p9 }
  0x1b   :  { %p332_p12 = pnand %p331_p11, %p325_p8 }
  0x1e   :  { %261 = vmatmul.mubr.msk.f32.vlgmr.msra.gmra.mrb[0].mxu0 %vm27_vm0, %v24_v1 }
  0x1f   :  { %268 = vmatmul.mubr.msk.f32.vlgmr.msra.gmra.mrb[0].mxu1 %vm27_vm0, %v26_v4 }
  0xf1   :  { %v262_v6 = vpop.f32.mrb[0].mxu0 }
  0xf2   :  { %v245_v7 = vmul.f32 -1.442695, %v262_v6  ;;  %v269_v8 = vpop.f32.mrb[0].mxu1  ;;  %v100_v9 = vpop.f32.mrb[1].mxu0 }
  0xf3   :  { %v247_v10 = vmul.f32 -1.442695, %v269_v8  ;;  %v244_v11 = vmul.f32 -1.442695, %v100_v9  ;;  %v181_v12 = vpop.f32.mrb[1].mxu1 }
  0xf4   :  { %286 = vpow2.f32 %v245_v7  ;;  %v246_v13 = vmul.f32 -1.442695, %v181_v12 }
  0xf5   :  { %288 = vpow2.f32 %v247_v10 }
  0xf6   :  { %290 = vpow2.f32 %v244_v11 }
  0xf7   :  { %292 = vpow2.f32 %v246_v13 }
  0xfe   :  { %v287_v14 = vpop.eup %286 }
  0xff   :  { %v289_v15 = vpop.eup %288  ;;  %v203_v16 = vadd.f32 1.0, %v287_v14 }
 0x100   :  { %v291_v17 = vpop.eup %290  ;;  %v205_v18 = vadd.f32 1.0, %v289_v15 }
 0x101   :  { %v293_v19 = vpop.eup %292  ;;  %294 = vrcp.f32 %v203_v16  ;;  %v202_v20 = vadd.f32 1.0, %v291_v17 }
 0x102   :  { %296 = vrcp.f32 %v205_v18  ;;  %v204_v21 = vadd.f32 1.0, %v293_v19 }
 0x103   :  { %298 = vrcp.f32 %v202_v20 }
 0x104   :  { %300 = vrcp.f32 %v204_v21 }
 0x10b   :  { %v295_v22 = vpop.eup %294 }
 0x10c   :  { %v297_v23 = vpop.eup %296  ;;  %216 = vst.msk [vmem:[#allocation5 + $0x8] sm:$0xff] %vm214_vm2, %v295_v22 }
 0x10d   :  { %v299_v24 = vpop.eup %298  ;;  %218 = vst.msk [vmem:[#allocation5 + $0x18] sm:$0xff] %vm214_vm2, %v297_v23 }
 0x10e   :  { %v301_v25 = vpop.eup %300  ;;  %215 = vst.msk [vmem:[#allocation5] sm:$0xff] %vm214_vm2, %v299_v24 }
 0x10f   :  { %217 = vst.msk [vmem:[#allocation5 + $0x10] sm:$0xff] %vm214_vm2, %v301_v25 }
 0x110   :  { %335 = shalt.err (!%p332_p12)
}
 0x111   :  { %s336_s24 = scalar_lea.hbm %s395_s1, 512 }
 0x112   :  { %p337_p13 = scmp.ne.s32.totalorder %s395_s1, %s336_s24  ;;  %p340_p0 = scmp.lt.u32.totalorder %s336_s24, %s395_s1 }
 0x114   :  { %p342_p1 = pnand %p340_p0, %p337_p13 }
 0x116   :  { %345 = shalt.err (!%p342_p1)
}
 0x117   :  { %230 = dma.vmem_to_hbm [thread:$0]  %s225_s20, 512, %s395_s1, [#allocation4], %s351_s16, %s351_s16, %s352_s17  }
 0x118   :  { %348 = dma.done.wait [#allocation4], 512  }
 0x119   :  { %349 = vsyncadd [#allocation4], 4294966784 }
 0x11a   :  { %234 = vsyncpa [#allocation3], 1 }
 0x11b   :  { %235 = vsyncpa [#allocation4], 1 }

</bundles_post_ra>
